<compile_context>
chip_gen: v6e
topology: v6e:2x2x1
jax: 0.10.0
libtpu: 0.0.40
codegen_flags: <defaults>
</compile_context>

<pallas_src>
import functools

import jax
import jax.numpy as jnp
import numpy as np
from jax.experimental import pallas as pl
from jax.experimental.pallas import tpu as pltpu

EPS = 1e-5

# ---------------------------------------------------------------------------
# Chip-aware budgets (v5e/v6e: 128 MiB VMEM; v7x: 64 MiB per TensorCore).
# ---------------------------------------------------------------------------
_TPU_VMEM_CAP = None


def _tpu_vmem_capacity():
    global _TPU_VMEM_CAP
    if _TPU_VMEM_CAP is None:
        cap = 0
        try:
            cap = int(pltpu.get_tpu_info().vmem_capacity_bytes)
        except Exception:
            cap = 0
        _TPU_VMEM_CAP = cap if cap > 0 else 64 * 1024 * 1024  # conservative default
    return _TPU_VMEM_CAP


def _block_bytes_cap():
    """Per-input-block cap: ~8 MiB on 128-MiB-VMEM chips, ~4 MiB on v7x."""
    return int(min(8 * 1024 * 1024, max(_tpu_vmem_capacity() // 16, 1024 * 1024)))


def _vmem_limit_bytes():
    """Scoped VMEM limit: ~96 MiB on v5e/v6e, ~48 MiB on v7x."""
    cap = _tpu_vmem_capacity()
    return int(min(96 * 1024 * 1024, max(32 * 1024 * 1024, cap * 3 // 4)))


# Fused single-kernel (1 read + 1 write) path gate.
_FUSED_MAX_F32_BYTES = 4 * 1024 * 1024
_FUSED_MAX_BATCH = 64       # bound on the statically unrolled per-batch loop


def _sublane_multiple(dtype):
    """Native sublane packing: 8 rows for 4-byte, 16 for 2-byte, 32 for 1-byte."""
    return int(max(8, 32 // jnp.dtype(dtype).itemsize))


def _largest_divisor_tile(extent, multiple, max_tile):
    best = None
    t = multiple
    top = min(extent, max_tile)
    while t <= top:
        if extent % t == 0:
            best = t
        t += multiple
    return best


def _pick_tiles(b, c, hw, itemsize, sub, cap_bytes):
    """(c_tile, hw_tile): dtype-/chip-aware, lane-dense tiles under cap_bytes."""
    per_elem = 2 * itemsize + 4                 # in block + out block + f32 temps
    max_elems = max(cap_bytes // per_elem, sub * 128)
    # Lane tile: keep rows full (lane-dense) unless H*W alone is huge.
    if hw <= 128 or hw * sub <= max_elems:
        hw_tile = hw
    else:
        hw_tile = _largest_divisor_tile(hw, 128, max(max_elems // sub, 128)) or hw
    # Channel (sublane) tile.
    row_budget = max(max_elems // hw_tile, 1)
    c_tile = _largest_divisor_tile(c, sub, row_budget) or c
    # v7x megacore: make sure the grid has >= 2 steps so both TCs get work.
    if b * (c // c_tile) * (hw // hw_tile) < 2:
        smaller_c = _largest_divisor_tile(c, sub, max(c_tile // 2, 1))
        if smaller_c is not None:
            c_tile = smaller_c
        else:
            smaller_hw = _largest_divisor_tile(hw, 128, max(hw_tile // 2, 1))
            if smaller_hw is not None:
                hw_tile = smaller_hw
    return c_tile, hw_tile


# ---------------------------------------------------------------------------
# Kernels
# ---------------------------------------------------------------------------
def _stats_kernel(x_ref, stats_ref, *, hw_total, exact):
    """Per-(b, c) mean / std into stats[..., 0] / stats[..., 1] (float32)."""
    x = x_ref[...].astype(jnp.float32)                        # (1, ct, hw_tile)
    if exact:
        # Full H*W in the block: exact two-pass variance (no cancellation).
        mean = jnp.sum(x, axis=-1, keepdims=True) * (1.0 / hw_total)
        cen = x - mean
        var = jnp.sum(cen * cen, axis=-1, keepdims=True) * (1.0 / (hw_total - 1))
        stats_ref[:, :, 0:1] = mean
        stats_ref[:, :, 1:2] = jnp.sqrt(var + EPS)
    else:
        # Lane-tiled fallback (very large H*W): one-pass sum / sum-of-squares
        # accumulated in the resident f32 output block (axis 2 is "arbitrary").
        k = pl.program_id(2)

        @pl.when(k == 0)
        def _():
            stats_ref[...] = jnp.zeros_like(stats_ref)

        stats_ref[:, :, 0:1] += jnp.sum(x, axis=-1, keepdims=True)
        stats_ref[:, :, 1:2] += jnp.sum(x * x, axis=-1, keepdims=True)

        @pl.when(k == pl.num_programs(2) - 1)
        def _():
            mean = stats_ref[:, :, 0:1] * (1.0 / hw_total)
            var = (stats_ref[:, :, 1:2] - hw_total * mean * mean) * (1.0 / (hw_total - 1))
            var = jnp.maximum(var, 0.0)               # guard cancellation
            stats_ref[:, :, 0:1] = mean
            stats_ref[:, :, 1:2] = jnp.sqrt(var + EPS)


def _apply_kernel(isrc_ref, osrc_ref, x_ref, xst_ref, ist_ref, ost_ref, o_ref,
                  *, w0, a1, a2):
    """AdaIN mix folded into a per-(b,c) scale/bias FMA.

    The style-sample stats (ist/ost) arrive via data-dependent index maps using
    the SMEM-prefetched in_src/out_src, so no XLA-level gather is needed.
    """
    del isrc_ref, osrc_ref                     # used only inside the index maps
    x_mean = xst_ref[:, :, 0:1]
    x_std = xst_ref[:, :, 1:2]
    mix_mean = w0 * x_mean + a1 * ist_ref[:, :, 0:1] + a2 * ost_ref[:, :, 0:1]
    mix_std = w0 * x_std + a1 * ist_ref[:, :, 1:2] + a2 * ost_ref[:, :, 1:2]
    scale = mix_std / x_std                    # x_std = sqrt(var + eps) > 0
    bias = mix_mean - x_mean * scale
    x = x_ref[...].astype(jnp.float32)         # (1, ct, hw_tile)
    o_ref[...] = (x * scale + bias).astype(o_ref.dtype)


def _fused_kernel(isrc_ref, osrc_ref, x_ref, o_ref, mean_scr, std_scr,
                  *, hw, w0, a1, a2):
    """Single-kernel path: content VMEM-resident, 1 read + 1 write of HBM."""
    bsz = x_ref.shape[0]
    x = x_ref[...].astype(jnp.float32)                         # (B, C, HW)
    mean = jnp.sum(x, axis=-1, keepdims=True) * (1.0 / hw)     # (B, C, 1)
    cen = x - mean
    var = jnp.sum(cen * cen, axis=-1, keepdims=True) * (1.0 / (hw - 1))
    mean_scr[...] = mean
    std_scr[...] = jnp.sqrt(var + EPS)
    for bi in range(bsz):                                      # B is small here
        si = isrc_ref[bi]                                      # SMEM scalars
        so = osrc_ref[bi]
        x_mean = mean_scr[bi]                                  # (C, 1)
        x_std = std_scr[bi]
        mix_mean = w0 * x_mean + a1 * mean_scr[si] + a2 * mean_scr[so]
        mix_std = w0 * x_std + a1 * std_scr[si] + a2 * std_scr[so]
        scale = mix_std / x_std
        bias = mix_mean - x_mean * scale
        o_ref[bi] = (x_ref[bi].astype(jnp.float32) * scale + bias).astype(o_ref.dtype)


# ---------------------------------------------------------------------------
# Pallas-call wrappers
# ---------------------------------------------------------------------------
def _adain_fused(x3, in_src, out_src, w0, a1, a2):
    b, c, hw = x3.shape
    kernel = functools.partial(_fused_kernel, hw=hw, w0=w0, a1=a1, a2=a2)
    return pl.pallas_call(
        kernel,
        out_shape=jax.ShapeDtypeStruct((b, c, hw), x3.dtype),
        grid_spec=pltpu.PrefetchScalarGridSpec(
            num_scalar_prefetch=2,
            grid=(1,),
            in_specs=[pl.BlockSpec((b, c, hw), lambda i, isr, osr: (0, 0, 0))],
            out_specs=pl.BlockSpec((b, c, hw), lambda i, isr, osr: (0, 0, 0)),
            scratch_shapes=[pltpu.VMEM((b, c, 1), jnp.float32),
                            pltpu.VMEM((b, c, 1), jnp.float32)]),
        compiler_params=pltpu.CompilerParams(
            dimension_semantics=("arbitrary",),
            vmem_limit_bytes=_vmem_limit_bytes()),
    )(in_src, out_src, x3)


def _adain_two_pass(x3, in_src, out_src, w0, a1, a2):
    b, c, hw = x3.shape
    itemsize = jnp.dtype(x3.dtype).itemsize
    sub = _sublane_multiple(x3.dtype)
    c_tile, hw_tile = _pick_tiles(b, c, hw, itemsize, sub, _block_bytes_cap())
    n_c, n_hw = c // c_tile, hw // hw_tile
    vmem_limit = _vmem_limit_bytes()

    # Pass 1: per-(b, c) stats -> (B, C, 2) f32  ([..., 0]=mean, [..., 1]=std).
    stats_kernel = functools.partial(_stats_kernel, hw_total=hw, exact=(n_hw == 1))
    stats = pl.pallas_call(
        stats_kernel,
        out_shape=jax.ShapeDtypeStruct((b, c, 2), jnp.float32),
        grid=(b, n_c, n_hw),
        in_specs=[pl.BlockSpec((1, c_tile, hw_tile), lambda i, j, k: (i, j, k))],
        out_specs=pl.BlockSpec((1, c_tile, 2), lambda i, j, k: (i, j, 0)),
        compiler_params=pltpu.CompilerParams(
            dimension_semantics=("parallel", "parallel", "arbitrary"),
            vmem_limit_bytes=vmem_limit),
    )(x3)

    # Pass 2: scale/bias + FMA; style stats gathered via data-dependent index
    # maps driven by the SMEM-prefetched batch indices (no XLA-level gather).
    apply_kernel = functools.partial(_apply_kernel, w0=w0, a1=a1, a2=a2)
    out3 = pl.pallas_call(
        apply_kernel,
        out_shape=jax.ShapeDtypeStruct((b, c, hw), x3.dtype),
        grid_spec=pltpu.PrefetchScalarGridSpec(
            num_scalar_prefetch=2,
            grid=(b, n_c, n_hw),
            in_specs=[
                pl.BlockSpec((1, c_tile, hw_tile),
                             lambda i, j, k, isr, osr: (i, j, k)),
                pl.BlockSpec((1, c_tile, 2),
                             lambda i, j, k, isr, osr: (i, j, 0)),
                pl.BlockSpec((1, c_tile, 2),
                             lambda i, j, k, isr, osr: (isr[i], j, 0)),
                pl.BlockSpec((1, c_tile, 2),
                             lambda i, j, k, isr, osr: (osr[i], j, 0)),
            ],
            out_specs=pl.BlockSpec((1, c_tile, hw_tile),
                                   lambda i, j, k, isr, osr: (i, j, k))),
        compiler_params=pltpu.CompilerParams(
            dimension_semantics=("parallel", "parallel", "parallel"),
            vmem_limit_bytes=vmem_limit),
    )(in_src, out_src, x3, stats, stats, stats)
    return out3


@functools.partial(jax.jit, static_argnames=("alpha1", "alpha2", "force_two_pass"))
def adain2d_pallas(content, in_src, out_src, *, alpha1, alpha2,
                   force_two_pass=False):
    """AdaIN style mixing.

    content: (B, C, H, W).  in_src/out_src: (B,) int32 batch indices such that
    In_style[b] == content[in_src[b]] and Out_style[b] == content[out_src[b]].
    """
    b, c, h, w = content.shape
    hw = h * w
    if hw < 2:
        raise ValueError("AdaIN needs H*W >= 2 (unbiased variance).")
    x3 = content.reshape(b, c, hw)
    in_src = jnp.asarray(in_src, dtype=jnp.int32)
    out_src = jnp.asarray(out_src, dtype=jnp.int32)

    a1, a2 = float(alpha1), float(alpha2)
    w0 = 1.0 - a1 - a2

    f32_bytes = b * c * hw * 4
    use_fused = (not force_two_pass
                 and f32_bytes <= min(_FUSED_MAX_F32_BYTES, _block_bytes_cap())
                 and b <= _FUSED_MAX_BATCH)
    if use_fused:
        out3 = _adain_fused(x3, in_src, out_src, w0, a1, a2)
    else:
        out3 = _adain_two_pass(x3, in_src, out_src, w0, a1, a2)
    return out3.reshape(b, c, h, w)


# ---------------------------------------------------------------------------
# StyleBlock.forward (host-side random style-index selection, as in PyTorch)
# ---------------------------------------------------------------------------
def style_block_forward(content, labels, *, alpha1, alpha2,
                        style_type="Inclass_Outclass", seed=0):
    """Reproduces StyleBlock.forward.  content: (B, C, H, W), labels: (B,)."""
    labels_np = np.asarray(labels)
    b = content.shape[0]
    rng = np.random.default_rng(seed)

    in_src = np.arange(b, dtype=np.int32)
    out_src = np.arange(b, dtype=np.int32)

    if "Inclass" in style_type:
        for label in np.unique(labels_np):
            label_index = np.where(labels_np == label)[0]
            if len(label_index) > 1:
                # torch.randint(high=len-1) samples from [0, len-2]
                idx = int(rng.integers(0, len(label_index) - 1))
            else:
                idx = 0
            in_src[label_index] = int(label_index[idx])

    if "Outclass" in style_type:
        for label in np.unique(labels_np):
            inclass = np.where(labels_np == label)[0]
            outclass = np.where(labels_np != label)[0]
            if len(outclass) == 0:
                continue
            idx = int(rng.integers(0, max(len(outclass) - 1, 1)))
            out_src[inclass] = int(outclass[idx])
    else:
        raise Exception("The style_block must be Inclass or Outclass")

    out = adain2d_pallas(content, jnp.asarray(in_src), jnp.asarray(out_src),
                         alpha1=alpha1, alpha2=alpha2)
    return out, in_src, out_src


def _adain_reference(x, in_style, out_style, alpha1, alpha2):
    """Pure-JAX reference mirroring the PyTorch Adain2d.forward."""
    b, c, h, w = x.shape

    def stats(v):
        vf = v.reshape(b, c, -1).astype(jnp.float32)
        mean = jnp.mean(vf, axis=2)
        var = jnp.var(vf, axis=2, ddof=1) + EPS
        return mean.reshape(b, c, 1, 1), jnp.sqrt(var).reshape(b, c, 1, 1)

    x_mean, x_std = stats(x)
    in_mean, in_std = stats(in_style)
    out_mean, out_std = stats(out_style)
    norm = (x.astype(jnp.float32) - x_mean) / x_std
    w0 = 1.0 - alpha1 - alpha2
    mix_std = w0 * x_std + alpha1 * in_std + alpha2 * out_std
    mix_mean = w0 * x_mean + alpha1 * in_mean + alpha2 * out_mean
    return (norm * mix_std + mix_mean).astype(x.dtype)


if __name__ == "__main__":
    key = jax.random.PRNGKey(0)
    alpha1, alpha2 = 0.3, 0.2   # StyleBlock(feature, style_type, alpha1, alpha2)

    cases = [
        ((4, 4, 16, 16), jnp.array([0, 0, 1, 1], dtype=jnp.int32)),
        ((8, 32, 8, 8), jnp.array([0, 1, 2, 3, 0, 1, 2, 3], dtype=jnp.int32)),
    ]

    for shape, labels in cases:
        key, sub = jax.random.split(key)
        content = jax.random.normal(sub, shape, dtype=jnp.float32) * 2.0 + 1.0

        # Default dispatch (fused 1R+1W path at these sizes).
        out, in_src, out_src = style_block_forward(
            content, labels, alpha1=alpha1, alpha2=alpha2,
            style_type="Inclass_Outclass", seed=0)
        out = jax.block_until_ready(out)

        in_style = content[jnp.asarray(in_src)]
        out_style = content[jnp.asarray(out_src)]
        ref = _adain_reference(content, in_style, out_style, alpha1, alpha2)
        np.testing.assert_allclose(np.asarray(out), np.asarray(ref),
                                   rtol=2e-4, atol=3e-5)

        # Also exercise the two-pass (large-tensor) path explicitly.
        out2 = adain2d_pallas(content, jnp.asarray(in_src), jnp.asarray(out_src),
                              alpha1=alpha1, alpha2=alpha2, force_two_pass=True)
        out2 = jax.block_until_ready(out2)
        np.testing.assert_allclose(np.asarray(out2), np.asarray(ref),
                                   rtol=2e-4, atol=3e-5)

    print("KERNEL_OK")
</pallas_src>

<mosaic_0001>
module attributes {stable_mosaic.version = 11 : i64} {
  func.func @_fused_kernel(%arg0: i32, %arg1: memref<4xi32, #tpu.memory_space<smem>>, %arg2: memref<4xi32, #tpu.memory_space<smem>>, %arg3: memref<4x4x256xf32, #tpu.memory_space<vmem>>, %arg4: memref<4x4x256xf32, #tpu.memory_space<vmem>>, %arg5: memref<4x4x1xf32, #tpu.memory_space<vmem>>, %arg6: memref<4x4x1xf32, #tpu.memory_space<vmem>>) attributes {dimension_semantics = [#tpu.dimension_semantics<arbitrary>], iteration_bounds = array<i64: 1>, scalar_prefetch = 2 : i64, scratch_operands = 2 : i64, tpu.core_type = #tpu.core_type<tc>, window_params = [{pipeline_mode = #tpu.pipeline_mode<synchronous>, transform_indices = @transform_0, window_bounds = array<i64: 4, 4, 256>}, {pipeline_mode = #tpu.pipeline_mode<synchronous>, transform_indices = @transform_1, window_bounds = array<i64: 4, 4, 256>}]} {
    %c0 = arith.constant 0 : index
    %c0_0 = arith.constant 0 : index
    %c0_1 = arith.constant 0 : index
    %0 = vector.load %arg3[%c0, %c0_0, %c0_1] : memref<4x4x256xf32, #tpu.memory_space<vmem>>, vector<4x4x256xf32>
    %cst = arith.constant dense<0.000000e+00> : vector<4x4xf32>
    %1 = vector.multi_reduction <add>, %0, %cst [2] : vector<4x4x256xf32> to vector<4x4xf32>
    %2 = vector.shape_cast %1 : vector<4x4xf32> to vector<4x4x1xf32>
    %cst_2 = arith.constant 3.906250e-03 : f32
    %3 = vector.broadcast %cst_2 : f32 to vector<4x4x1xf32>
    %4 = arith.mulf %2, %3 : vector<4x4x1xf32>
    %5 = vector.broadcast %4 : vector<4x4x1xf32> to vector<4x4x256xf32>
    %6 = arith.subf %0, %5 : vector<4x4x256xf32>
    %7 = arith.mulf %6, %6 : vector<4x4x256xf32>
    %cst_3 = arith.constant dense<0.000000e+00> : vector<4x4xf32>
    %8 = vector.multi_reduction <add>, %7, %cst_3 [2] : vector<4x4x256xf32> to vector<4x4xf32>
    %9 = vector.shape_cast %8 : vector<4x4xf32> to vector<4x4x1xf32>
    %cst_4 = arith.constant 0.00392156886 : f32
    %10 = vector.broadcast %cst_4 : f32 to vector<4x4x1xf32>
    %11 = arith.mulf %9, %10 : vector<4x4x1xf32>
    %c0_5 = arith.constant 0 : index
    %c0_6 = arith.constant 0 : index
    %c0_7 = arith.constant 0 : index
    %12 = vector.load %arg5[%c0_5, %c0_6, %c0_7] : memref<4x4x1xf32, #tpu.memory_space<vmem>>, vector<4x4x1xf32>
    tpu.vector_store %arg5[%c0_5, %c0_6, %c0_7], %4 {strides = array<i32>} : memref<4x4x1xf32, #tpu.memory_space<vmem>>, vector<4x4x1xf32>,
    %cst_8 = arith.constant 9.99999974E-6 : f32
    %13 = vector.broadcast %cst_8 : f32 to vector<4x4x1xf32>
    %14 = arith.addf %11, %13 : vector<4x4x1xf32>
    %15 = math.sqrt %14 : vector<4x4x1xf32>
    %c0_9 = arith.constant 0 : index
    %c0_10 = arith.constant 0 : index
    %c0_11 = arith.constant 0 : index
    %16 = vector.load %arg6[%c0_9, %c0_10, %c0_11] : memref<4x4x1xf32, #tpu.memory_space<vmem>>, vector<4x4x1xf32>
    tpu.vector_store %arg6[%c0_9, %c0_10, %c0_11], %15 {strides = array<i32>} : memref<4x4x1xf32, #tpu.memory_space<vmem>>, vector<4x4x1xf32>,
    %c0_12 = arith.constant 0 : index
    %17 = memref.load %arg1[%c0_12] : memref<4xi32, #tpu.memory_space<smem>>
    %c0_13 = arith.constant 0 : index
    %18 = memref.load %arg2[%c0_13] : memref<4xi32, #tpu.memory_space<smem>>
    %c0_14 = arith.constant 0 : index
    %c0_15 = arith.constant 0 : index
    %c0_16 = arith.constant 0 : index
    %19 = vector.load %arg5[%c0_14, %c0_15, %c0_16] : memref<4x4x1xf32, #tpu.memory_space<vmem>>, vector<1x4x1xf32>
    %20 = vector.shape_cast %19 : vector<1x4x1xf32> to vector<4x1xf32>
    %c0_17 = arith.constant 0 : index
    %c0_18 = arith.constant 0 : index
    %c0_19 = arith.constant 0 : index
    %21 = vector.load %arg6[%c0_17, %c0_18, %c0_19] : memref<4x4x1xf32, #tpu.memory_space<vmem>>, vector<1x4x1xf32>
    %22 = vector.shape_cast %21 : vector<1x4x1xf32> to vector<4x1xf32>
    %cst_20 = arith.constant 5.000000e-01 : f32
    %23 = vector.broadcast %cst_20 : f32 to vector<4x1xf32>
    %24 = arith.mulf %23, %20 : vector<4x1xf32>
    %25 = arith.index_cast %17 : i32 to index
    %c0_21 = arith.constant 0 : index
    %c0_22 = arith.constant 0 : index
    %26 = vector.load %arg5[%25, %c0_21, %c0_22] : memref<4x4x1xf32, #tpu.memory_space<vmem>>, vector<1x4x1xf32>
    %27 = vector.shape_cast %26 : vector<1x4x1xf32> to vector<4x1xf32>
    %cst_23 = arith.constant 3.000000e-01 : f32
    %28 = vector.broadcast %cst_23 : f32 to vector<4x1xf32>
    %29 = arith.mulf %28, %27 : vector<4x1xf32>
    %30 = arith.addf %24, %29 : vector<4x1xf32>
    %31 = arith.index_cast %18 : i32 to index
    %c0_24 = arith.constant 0 : index
    %c0_25 = arith.constant 0 : index
    %32 = vector.load %arg5[%31, %c0_24, %c0_25] : memref<4x4x1xf32, #tpu.memory_space<vmem>>, vector<1x4x1xf32>
    %33 = vector.shape_cast %32 : vector<1x4x1xf32> to vector<4x1xf32>
    %cst_26 = arith.constant 2.000000e-01 : f32
    %34 = vector.broadcast %cst_26 : f32 to vector<4x1xf32>
    %35 = arith.mulf %34, %33 : vector<4x1xf32>
    %36 = arith.addf %30, %35 : vector<4x1xf32>
    %cst_27 = arith.constant 5.000000e-01 : f32
    %37 = vector.broadcast %cst_27 : f32 to vector<4x1xf32>
    %38 = arith.mulf %37, %22 : vector<4x1xf32>
    %39 = arith.index_cast %17 : i32 to index
    %c0_28 = arith.constant 0 : index
    %c0_29 = arith.constant 0 : index
    %40 = vector.load %arg6[%39, %c0_28, %c0_29] : memref<4x4x1xf32, #tpu.memory_space<vmem>>, vector<1x4x1xf32>
    %41 = vector.shape_cast %40 : vector<1x4x1xf32> to vector<4x1xf32>
    %cst_30 = arith.constant 3.000000e-01 : f32
    %42 = vector.broadcast %cst_30 : f32 to vector<4x1xf32>
    %43 = arith.mulf %42, %41 : vector<4x1xf32>
    %44 = arith.addf %38, %43 : vector<4x1xf32>
    %45 = arith.index_cast %18 : i32 to index
    %c0_31 = arith.constant 0 : index
    %c0_32 = arith.constant 0 : index
    %46 = vector.load %arg6[%45, %c0_31, %c0_32] : memref<4x4x1xf32, #tpu.memory_space<vmem>>, vector<1x4x1xf32>
    %47 = vector.shape_cast %46 : vector<1x4x1xf32> to vector<4x1xf32>
    %cst_33 = arith.constant 2.000000e-01 : f32
    %48 = vector.broadcast %cst_33 : f32 to vector<4x1xf32>
    %49 = arith.mulf %48, %47 : vector<4x1xf32>
    %50 = arith.addf %44, %49 : vector<4x1xf32>
    %51 = arith.divf %50, %22 : vector<4x1xf32>
    %52 = arith.mulf %20, %51 : vector<4x1xf32>
    %53 = arith.subf %36, %52 : vector<4x1xf32>
    %c0_34 = arith.constant 0 : index
    %c0_35 = arith.constant 0 : index
    %c0_36 = arith.constant 0 : index
    %54 = vector.load %arg3[%c0_34, %c0_35, %c0_36] : memref<4x4x256xf32, #tpu.memory_space<vmem>>, vector<1x4x256xf32>
    %55 = vector.shape_cast %54 : vector<1x4x256xf32> to vector<4x256xf32>
    %56 = vector.broadcast %51 : vector<4x1xf32> to vector<4x256xf32>
    %57 = arith.mulf %55, %56 : vector<4x256xf32>
    %58 = vector.broadcast %53 : vector<4x1xf32> to vector<4x256xf32>
    %59 = arith.addf %57, %58 : vector<4x256xf32>
    %c0_37 = arith.constant 0 : index
    %c0_38 = arith.constant 0 : index
    %c0_39 = arith.constant 0 : index
    %60 = vector.load %arg4[%c0_37, %c0_38, %c0_39] : memref<4x4x256xf32, #tpu.memory_space<vmem>>, vector<1x4x256xf32>
    %61 = vector.shape_cast %60 : vector<1x4x256xf32> to vector<4x256xf32>
    %62 = vector.shape_cast %59 : vector<4x256xf32> to vector<1x4x256xf32>
    tpu.vector_store %arg4[%c0_37, %c0_38, %c0_39], %62 {strides = array<i32>} : memref<4x4x256xf32, #tpu.memory_space<vmem>>, vector<1x4x256xf32>,
    %c1 = arith.constant 1 : index
    %63 = memref.load %arg1[%c1] : memref<4xi32, #tpu.memory_space<smem>>
    %c1_40 = arith.constant 1 : index
    %64 = memref.load %arg2[%c1_40] : memref<4xi32, #tpu.memory_space<smem>>
    %c1_41 = arith.constant 1 : index
    %c0_42 = arith.constant 0 : index
    %c0_43 = arith.constant 0 : index
    %65 = vector.load %arg5[%c1_41, %c0_42, %c0_43] : memref<4x4x1xf32, #tpu.memory_space<vmem>>, vector<1x4x1xf32>
    %66 = vector.shape_cast %65 : vector<1x4x1xf32> to vector<4x1xf32>
    %c1_44 = arith.constant 1 : index
    %c0_45 = arith.constant 0 : index
    %c0_46 = arith.constant 0 : index
    %67 = vector.load %arg6[%c1_44, %c0_45, %c0_46] : memref<4x4x1xf32, #tpu.memory_space<vmem>>, vector<1x4x1xf32>
    %68 = vector.shape_cast %67 : vector<1x4x1xf32> to vector<4x1xf32>
    %cst_47 = arith.constant 5.000000e-01 : f32
    %69 = vector.broadcast %cst_47 : f32 to vector<4x1xf32>
    %70 = arith.mulf %69, %66 : vector<4x1xf32>
    %71 = arith.index_cast %63 : i32 to index
    %c0_48 = arith.constant 0 : index
    %c0_49 = arith.constant 0 : index
    %72 = vector.load %arg5[%71, %c0_48, %c0_49] : memref<4x4x1xf32, #tpu.memory_space<vmem>>, vector<1x4x1xf32>
    %73 = vector.shape_cast %72 : vector<1x4x1xf32> to vector<4x1xf32>
    %cst_50 = arith.constant 3.000000e-01 : f32
    %74 = vector.broadcast %cst_50 : f32 to vector<4x1xf32>
    %75 = arith.mulf %74, %73 : vector<4x1xf32>
    %76 = arith.addf %70, %75 : vector<4x1xf32>
    %77 = arith.index_cast %64 : i32 to index
    %c0_51 = arith.constant 0 : index
    %c0_52 = arith.constant 0 : index
    %78 = vector.load %arg5[%77, %c0_51, %c0_52] : memref<4x4x1xf32, #tpu.memory_space<vmem>>, vector<1x4x1xf32>
    %79 = vector.shape_cast %78 : vector<1x4x1xf32> to vector<4x1xf32>
    %cst_53 = arith.constant 2.000000e-01 : f32
    %80 = vector.broadcast %cst_53 : f32 to vector<4x1xf32>
    %81 = arith.mulf %80, %79 : vector<4x1xf32>
    %82 = arith.addf %76, %81 : vector<4x1xf32>
    %cst_54 = arith.constant 5.000000e-01 : f32
    %83 = vector.broadcast %cst_54 : f32 to vector<4x1xf32>
    %84 = arith.mulf %83, %68 : vector<4x1xf32>
    %85 = arith.index_cast %63 : i32 to index
    %c0_55 = arith.constant 0 : index
    %c0_56 = arith.constant 0 : index
    %86 = vector.load %arg6[%85, %c0_55, %c0_56] : memref<4x4x1xf32, #tpu.memory_space<vmem>>, vector<1x4x1xf32>
    %87 = vector.shape_cast %86 : vector<1x4x1xf32> to vector<4x1xf32>
    %cst_57 = arith.constant 3.000000e-01 : f32
    %88 = vector.broadcast %cst_57 : f32 to vector<4x1xf32>
    %89 = arith.mulf %88, %87 : vector<4x1xf32>
    %90 = arith.addf %84, %89 : vector<4x1xf32>
    %91 = arith.index_cast %64 : i32 to index
    %c0_58 = arith.constant 0 : index
    %c0_59 = arith.constant 0 : index
    %92 = vector.load %arg6[%91, %c0_58, %c0_59] : memref<4x4x1xf32, #tpu.memory_space<vmem>>, vector<1x4x1xf32>
    %93 = vector.shape_cast %92 : vector<1x4x1xf32> to vector<4x1xf32>
    %cst_60 = arith.constant 2.000000e-01 : f32
    %94 = vector.broadcast %cst_60 : f32 to vector<4x1xf32>
    %95 = arith.mulf %94, %93 : vector<4x1xf32>
    %96 = arith.addf %90, %95 : vector<4x1xf32>
    %97 = arith.divf %96, %68 : vector<4x1xf32>
    %98 = arith.mulf %66, %97 : vector<4x1xf32>
    %99 = arith.subf %82, %98 : vector<4x1xf32>
    %c1_61 = arith.constant 1 : index
    %c0_62 = arith.constant 0 : index
    %c0_63 = arith.constant 0 : index
    %100 = vector.load %arg3[%c1_61, %c0_62, %c0_63] : memref<4x4x256xf32, #tpu.memory_space<vmem>>, vector<1x4x256xf32>
    %101 = vector.shape_cast %100 : vector<1x4x256xf32> to vector<4x256xf32>
    %102 = vector.broadcast %97 : vector<4x1xf32> to vector<4x256xf32>
    %103 = arith.mulf %101, %102 : vector<4x256xf32>
    %104 = vector.broadcast %99 : vector<4x1xf32> to vector<4x256xf32>
    %105 = arith.addf %103, %104 : vector<4x256xf32>
    %c1_64 = arith.constant 1 : index
    %c0_65 = arith.constant 0 : index
    %c0_66 = arith.constant 0 : index
    %106 = vector.load %arg4[%c1_64, %c0_65, %c0_66] : memref<4x4x256xf32, #tpu.memory_space<vmem>>, vector<1x4x256xf32>
    %107 = vector.shape_cast %106 : vector<1x4x256xf32> to vector<4x256xf32>
    %108 = vector.shape_cast %105 : vector<4x256xf32> to vector<1x4x256xf32>
    tpu.vector_store %arg4[%c1_64, %c0_65, %c0_66], %108 {strides = array<i32>} : memref<4x4x256xf32, #tpu.memory_space<vmem>>, vector<1x4x256xf32>,
    %c2 = arith.constant 2 : index
    %109 = memref.load %arg1[%c2] : memref<4xi32, #tpu.memory_space<smem>>
    %c2_67 = arith.constant 2 : index
    %110 = memref.load %arg2[%c2_67] : memref<4xi32, #tpu.memory_space<smem>>
    %c2_68 = arith.constant 2 : index
    %c0_69 = arith.constant 0 : index
    %c0_70 = arith.constant 0 : index
    %111 = vector.load %arg5[%c2_68, %c0_69, %c0_70] : memref<4x4x1xf32, #tpu.memory_space<vmem>>, vector<1x4x1xf32>
    %112 = vector.shape_cast %111 : vector<1x4x1xf32> to vector<4x1xf32>
    %c2_71 = arith.constant 2 : index
    %c0_72 = arith.constant 0 : index
    %c0_73 = arith.constant 0 : index
    %113 = vector.load %arg6[%c2_71, %c0_72, %c0_73] : memref<4x4x1xf32, #tpu.memory_space<vmem>>, vector<1x4x1xf32>
    %114 = vector.shape_cast %113 : vector<1x4x1xf32> to vector<4x1xf32>
    %cst_74 = arith.constant 5.000000e-01 : f32
    %115 = vector.broadcast %cst_74 : f32 to vector<4x1xf32>
    %116 = arith.mulf %115, %112 : vector<4x1xf32>
    %117 = arith.index_cast %109 : i32 to index
    %c0_75 = arith.constant 0 : index
    %c0_76 = arith.constant 0 : index
    %118 = vector.load %arg5[%117, %c0_75, %c0_76] : memref<4x4x1xf32, #tpu.memory_space<vmem>>, vector<1x4x1xf32>
    %119 = vector.shape_cast %118 : vector<1x4x1xf32> to vector<4x1xf32>
    %cst_77 = arith.constant 3.000000e-01 : f32
    %120 = vector.broadcast %cst_77 : f32 to vector<4x1xf32>
    %121 = arith.mulf %120, %119 : vector<4x1xf32>
    %122 = arith.addf %116, %121 : vector<4x1xf32>
    %123 = arith.index_cast %110 : i32 to index
    %c0_78 = arith.constant 0 : index
    %c0_79 = arith.constant 0 : index
    %124 = vector.load %arg5[%123, %c0_78, %c0_79] : memref<4x4x1xf32, #tpu.memory_space<vmem>>, vector<1x4x1xf32>
    %125 = vector.shape_cast %124 : vector<1x4x1xf32> to vector<4x1xf32>
    %cst_80 = arith.constant 2.000000e-01 : f32
    %126 = vector.broadcast %cst_80 : f32 to vector<4x1xf32>
    %127 = arith.mulf %126, %125 : vector<4x1xf32>
    %128 = arith.addf %122, %127 : vector<4x1xf32>
    %cst_81 = arith.constant 5.000000e-01 : f32
    %129 = vector.broadcast %cst_81 : f32 to vector<4x1xf32>
    %130 = arith.mulf %129, %114 : vector<4x1xf32>
    %131 = arith.index_cast %109 : i32 to index
    %c0_82 = arith.constant 0 : index
    %c0_83 = arith.constant 0 : index
    %132 = vector.load %arg6[%131, %c0_82, %c0_83] : memref<4x4x1xf32, #tpu.memory_space<vmem>>, vector<1x4x1xf32>
    %133 = vector.shape_cast %132 : vector<1x4x1xf32> to vector<4x1xf32>
    %cst_84 = arith.constant 3.000000e-01 : f32
    %134 = vector.broadcast %cst_84 : f32 to vector<4x1xf32>
    %135 = arith.mulf %134, %133 : vector<4x1xf32>
    %136 = arith.addf %130, %135 : vector<4x1xf32>
    %137 = arith.index_cast %110 : i32 to index
    %c0_85 = arith.constant 0 : index
    %c0_86 = arith.constant 0 : index
    %138 = vector.load %arg6[%137, %c0_85, %c0_86] : memref<4x4x1xf32, #tpu.memory_space<vmem>>, vector<1x4x1xf32>
    %139 = vector.shape_cast %138 : vector<1x4x1xf32> to vector<4x1xf32>
    %cst_87 = arith.constant 2.000000e-01 : f32
    %140 = vector.broadcast %cst_87 : f32 to vector<4x1xf32>
    %141 = arith.mulf %140, %139 : vector<4x1xf32>
    %142 = arith.addf %136, %141 : vector<4x1xf32>
    %143 = arith.divf %142, %114 : vector<4x1xf32>
    %144 = arith.mulf %112, %143 : vector<4x1xf32>
    %145 = arith.subf %128, %144 : vector<4x1xf32>
    %c2_88 = arith.constant 2 : index
    %c0_89 = arith.constant 0 : index
    %c0_90 = arith.constant 0 : index
    %146 = vector.load %arg3[%c2_88, %c0_89, %c0_90] : memref<4x4x256xf32, #tpu.memory_space<vmem>>, vector<1x4x256xf32>
    %147 = vector.shape_cast %146 : vector<1x4x256xf32> to vector<4x256xf32>
    %148 = vector.broadcast %143 : vector<4x1xf32> to vector<4x256xf32>
    %149 = arith.mulf %147, %148 : vector<4x256xf32>
    %150 = vector.broadcast %145 : vector<4x1xf32> to vector<4x256xf32>
    %151 = arith.addf %149, %150 : vector<4x256xf32>
    %c2_91 = arith.constant 2 : index
    %c0_92 = arith.constant 0 : index
    %c0_93 = arith.constant 0 : index
    %152 = vector.load %arg4[%c2_91, %c0_92, %c0_93] : memref<4x4x256xf32, #tpu.memory_space<vmem>>, vector<1x4x256xf32>
    %153 = vector.shape_cast %152 : vector<1x4x256xf32> to vector<4x256xf32>
    %154 = vector.shape_cast %151 : vector<4x256xf32> to vector<1x4x256xf32>
    tpu.vector_store %arg4[%c2_91, %c0_92, %c0_93], %154 {strides = array<i32>} : memref<4x4x256xf32, #tpu.memory_space<vmem>>, vector<1x4x256xf32>,
    %c3 = arith.constant 3 : index
    %155 = memref.load %arg1[%c3] : memref<4xi32, #tpu.memory_space<smem>>
    %c3_94 = arith.constant 3 : index
    %156 = memref.load %arg2[%c3_94] : memref<4xi32, #tpu.memory_space<smem>>
    %c3_95 = arith.constant 3 : index
    %c0_96 = arith.constant 0 : index
    %c0_97 = arith.constant 0 : index
    %157 = vector.load %arg5[%c3_95, %c0_96, %c0_97] : memref<4x4x1xf32, #tpu.memory_space<vmem>>, vector<1x4x1xf32>
    %158 = vector.shape_cast %157 : vector<1x4x1xf32> to vector<4x1xf32>
    %c3_98 = arith.constant 3 : index
    %c0_99 = arith.constant 0 : index
    %c0_100 = arith.constant 0 : index
    %159 = vector.load %arg6[%c3_98, %c0_99, %c0_100] : memref<4x4x1xf32, #tpu.memory_space<vmem>>, vector<1x4x1xf32>
    %160 = vector.shape_cast %159 : vector<1x4x1xf32> to vector<4x1xf32>
    %cst_101 = arith.constant 5.000000e-01 : f32
    %161 = vector.broadcast %cst_101 : f32 to vector<4x1xf32>
    %162 = arith.mulf %161, %158 : vector<4x1xf32>
    %163 = arith.index_cast %155 : i32 to index
    %c0_102 = arith.constant 0 : index
    %c0_103 = arith.constant 0 : index
    %164 = vector.load %arg5[%163, %c0_102, %c0_103] : memref<4x4x1xf32, #tpu.memory_space<vmem>>, vector<1x4x1xf32>
    %165 = vector.shape_cast %164 : vector<1x4x1xf32> to vector<4x1xf32>
    %cst_104 = arith.constant 3.000000e-01 : f32
    %166 = vector.broadcast %cst_104 : f32 to vector<4x1xf32>
    %167 = arith.mulf %166, %165 : vector<4x1xf32>
    %168 = arith.addf %162, %167 : vector<4x1xf32>
    %169 = arith.index_cast %156 : i32 to index
    %c0_105 = arith.constant 0 : index
    %c0_106 = arith.constant 0 : index
    %170 = vector.load %arg5[%169, %c0_105, %c0_106] : memref<4x4x1xf32, #tpu.memory_space<vmem>>, vector<1x4x1xf32>
    %171 = vector.shape_cast %170 : vector<1x4x1xf32> to vector<4x1xf32>
    %cst_107 = arith.constant 2.000000e-01 : f32
    %172 = vector.broadcast %cst_107 : f32 to vector<4x1xf32>
    %173 = arith.mulf %172, %171 : vector<4x1xf32>
    %174 = arith.addf %168, %173 : vector<4x1xf32>
    %cst_108 = arith.constant 5.000000e-01 : f32
    %175 = vector.broadcast %cst_108 : f32 to vector<4x1xf32>
    %176 = arith.mulf %175, %160 : vector<4x1xf32>
    %177 = arith.index_cast %155 : i32 to index
    %c0_109 = arith.constant 0 : index
    %c0_110 = arith.constant 0 : index
    %178 = vector.load %arg6[%177, %c0_109, %c0_110] : memref<4x4x1xf32, #tpu.memory_space<vmem>>, vector<1x4x1xf32>
    %179 = vector.shape_cast %178 : vector<1x4x1xf32> to vector<4x1xf32>
    %cst_111 = arith.constant 3.000000e-01 : f32
    %180 = vector.broadcast %cst_111 : f32 to vector<4x1xf32>
    %181 = arith.mulf %180, %179 : vector<4x1xf32>
    %182 = arith.addf %176, %181 : vector<4x1xf32>
    %183 = arith.index_cast %156 : i32 to index
    %c0_112 = arith.constant 0 : index
    %c0_113 = arith.constant 0 : index
    %184 = vector.load %arg6[%183, %c0_112, %c0_113] : memref<4x4x1xf32, #tpu.memory_space<vmem>>, vector<1x4x1xf32>
    %185 = vector.shape_cast %184 : vector<1x4x1xf32> to vector<4x1xf32>
    %cst_114 = arith.constant 2.000000e-01 : f32
    %186 = vector.broadcast %cst_114 : f32 to vector<4x1xf32>
    %187 = arith.mulf %186, %185 : vector<4x1xf32>
    %188 = arith.addf %182, %187 : vector<4x1xf32>
    %189 = arith.divf %188, %160 : vector<4x1xf32>
    %190 = arith.mulf %158, %189 : vector<4x1xf32>
    %191 = arith.subf %174, %190 : vector<4x1xf32>
    %c3_115 = arith.constant 3 : index
    %c0_116 = arith.constant 0 : index
    %c0_117 = arith.constant 0 : index
    %192 = vector.load %arg3[%c3_115, %c0_116, %c0_117] : memref<4x4x256xf32, #tpu.memory_space<vmem>>, vector<1x4x256xf32>
    %193 = vector.shape_cast %192 : vector<1x4x256xf32> to vector<4x256xf32>
    %194 = vector.broadcast %189 : vector<4x1xf32> to vector<4x256xf32>
    %195 = arith.mulf %193, %194 : vector<4x256xf32>
    %196 = vector.broadcast %191 : vector<4x1xf32> to vector<4x256xf32>
    %197 = arith.addf %195, %196 : vector<4x256xf32>
    %c3_118 = arith.constant 3 : index
    %c0_119 = arith.constant 0 : index
    %c0_120 = arith.constant 0 : index
    %198 = vector.load %arg4[%c3_118, %c0_119, %c0_120] : memref<4x4x256xf32, #tpu.memory_space<vmem>>, vector<1x4x256xf32>
    %199 = vector.shape_cast %198 : vector<1x4x256xf32> to vector<4x256xf32>
    %200 = vector.shape_cast %197 : vector<4x256xf32> to vector<1x4x256xf32>
    tpu.vector_store %arg4[%c3_118, %c0_119, %c0_120], %200 {strides = array<i32>} : memref<4x4x256xf32, #tpu.memory_space<vmem>>, vector<1x4x256xf32>,
    return
  }
  func.func @transform_0(%arg0: i32, %arg1: memref<4xi32, #tpu.memory_space<smem>>, %arg2: memref<4xi32, #tpu.memory_space<smem>>) -> (i32, i32, i32) {
    %c0_i32 = arith.constant 0 : i32
    %c0_i32_0 = arith.constant 0 : i32
    %c0_i32_1 = arith.constant 0 : i32
    %c0_i32_2 = arith.constant 0 : i32
    return %c0_i32, %c0_i32_0, %c0_i32_1 : i32, i32, i32
  }
  func.func @transform_1(%arg0: i32, %arg1: memref<4xi32, #tpu.memory_space<smem>>, %arg2: memref<4xi32, #tpu.memory_space<smem>>) -> (i32, i32, i32) {
    %c0_i32 = arith.constant 0 : i32
    %c0_i32_0 = arith.constant 0 : i32
    %c0_i32_1 = arith.constant 0 : i32
    %c0_i32_2 = arith.constant 0 : i32
    return %c0_i32, %c0_i32_0, %c0_i32_1 : i32, i32, i32
  }
}

</mosaic_0001>

<bundles_post_ra>
// kernel: adain2d_pallas.1
= control target key start
LH: loop header
LB: loop body
LE: loop exit
PB: predicated region body
PF: predicated region fallthrough
CT: control target
= control target key end

     0   :  { %s702_s0 = inlined_call_operand.vmem [shape: s32[4], index: 0, kind: input, shape index: {}]   ;;  %s703_s2 = inlined_call_operand.vmem [shape: f32[4,4,256], index: 2, kind: input, shape index: {}]   ;;  %s704_s3 = inlined_call_operand.vmem [shape: f32[4,4,256], index: 3, kind: output, shape index: {}]   ;;  %s705_s1 = inlined_call_operand.vmem [shape: s32[4], index: 1, kind: input, shape index: {}]  }
   0x1   :  { %s8_s14 = sshll.u32 %s702_s0, 4  ;;  %s12_s17 = sshll.u32 %s705_s1, 4  ;;  %s9_s14 = int_to_ptr.vmem [resolvable:$true] %s8_s14  ;;  %s13_s17 = int_to_ptr.vmem [resolvable:$true] %s12_s17 }
   0x2   :  { %s500_s18 = scalar_lea.vmem %s9_s14, 16  ;;  %p505_p1 = scmp.lt.s32.totalorder %s9_s14, %s9_s14 }
   0x3   :  { %p501_p0 = scmp.ne.s32.totalorder %s9_s14, %s500_s18  ;;  %p506_p2 = scmp.lt.s32.totalorder %s500_s18, %s500_s18 }
   0x5   :  { %p507_p3 = por %p506_p2, %p505_p1 }
   0x7   :  { %p508_p4 = pnand %p507_p3, %p501_p0 }
   0x9   :  { %511 = shalt.err (!%p508_p4)  }
   0xa   :  { %s526_s19 = smov [#allocation5]   ;;  %s512_s20 = scalar_lea.vmem %s13_s17, 16 }
   0xb   :  { %11 = dma.vmem_to_smem %s9_s14, 16, %s526_s19, [#allocation4] }
   0xc   :  { %p513_p5 = scmp.ne.s32.totalorder %s13_s17, %s512_s20  ;;  %p517_p6 = scmp.lt.s32.totalorder %s13_s17, %s13_s17 }
   0xd   :  { %p518_p7 = scmp.lt.s32.totalorder %s512_s20, %s512_s20 }
   0xf   :  { %p519_p8 = por %p518_p7, %p517_p6 }
  0x11   :  { %p520_p9 = pnand %p519_p8, %p513_p5 }
  0x13   :  { %523 = shalt.err (!%p520_p9)  }
  0x14   :  { %s527_s0 = smov [#allocation6]  }
  0x15   :  { %15 = dma.vmem_to_smem %s13_s17, 16, %s527_s0, [#allocation4] }
  0x16   :  { %524 = dma.done.wait [#allocation4], 32 }
  0x17   :  { %525 = vsyncadd [#allocation4], 4294967264 }
  0x18   :  { %17 = sfence }
  0x19   :  { %v559_v0 = vld [vmem:[%s703_s2 + $0x10] sm:$0xff]  ;;  %vm36_vm0 = vcmask 1043456   ;;  %v564_v1 = vld [vmem:[%s703_s2] sm:$0xff]  ;;  %v569_v2 = vld [vmem:[%s703_s2 + $0x18] sm:$0xff]  ;;  %v528_v20 = vmov 839922192   ;;  %v68_v22 = vlaneseq }
  0x1a   :  { %v30_v3 = vcombine.high %v559_v0, %v559_v0  ;;  %v47_v4 = vsel %vm36_vm0, %v559_v0, 0.0  ;;  %v28_v5 = vcombine.high %v564_v1, %v564_v1  ;;  %v37_v6 = vsel %vm36_vm0, %v564_v1, 0.0  ;;  %v582_v7 = vld [vmem:[%s703_s2 + $0x8] sm:$0xff]  ;;  %s619_s2 = sld [smem:[#allocation5]] }
  0x1b   :  { %v31_v8 = vcombine.high %v569_v2, %v569_v2  ;;  %v29_v9 = vcombine.high %v582_v7, %v582_v7  ;;  %v52_v12 = vsel %vm36_vm0, %v569_v2, 0.0  ;;  %v42_v13 = vsel %vm36_vm0, %v582_v7, 0.0  ;;  %s621_s28 = sld [smem:[#allocation6]] }
  0x1c   :  { %v48_v10 = vsel %vm36_vm0, %v30_v3, 0.0  ;;  %v38_v11 = vsel %vm36_vm0, %v28_v5, 0.0  ;;  %v66_v21 = vunpack.c.l.s4 %v528_v20  ;;  %v69_v24 = vshrl.u32 %v68_v22, 7  ;;  %s623_s29 = sld [smem:[#allocation5 + $0x1]] }
  0x1d   :  { %v49_v14 = vadd.f32 %v48_v10, %v47_v4  ;;  %v39_v15 = vadd.f32 %v38_v11, %v37_v6  ;;  %v53_v16 = vsel %vm36_vm0, %v31_v8, 0.0  ;;  %v43_v17 = vsel %vm36_vm0, %v29_v9, 0.0  ;;  %s627_s30 = sld [smem:[#allocation5 + $0x2]] }
  0x1e   :  { %v54_v18 = vadd.f32 %v53_v16, %v52_v12  ;;  %v44_v19 = vadd.f32 %v43_v17, %v42_v13  ;;  %v67_v23 = vunpack.c.0.s8 %v66_v21  ;;  %vm141_vm1 = vcmask 3072   ;;  %s629_s4 = sld [smem:[#allocation6 + $0x1]] }
  0x1f   :  { %50 = vadd.xlane.f32.xlu1 %v49_v14  ;;  %40 = vadd.xlane.f32.xlu0 %v39_v15  ;;  %v529_v62 = vmov 0   ;;  %s632_s5 = sld [smem:[#allocation6 + $0x2]] }
  0x20   :  { %v596_v25 = vsub.s32 %v67_v23, %v69_v24  ;;  %478 = vset.pattern.permute.xlu0 %v529_v62  ;;  %479 = vset.pattern.permute.xlu1 %v529_v62  ;;  %s634_s6 = sld [smem:[#allocation5 + $0x3]]  ;;  %s454_s7 = sshll.u32 %s619_s2, 2 }
  0x21   :  { %s455_s8 = sshll.u32 %s621_s28, 2  ;;  %s640_s11 = sld [smem:[#allocation6 + $0x3]] }
  0x22   :  { %s458_s9 = sshll.u32 %s623_s29, 2  ;;  %s198_s13 = scalar_lea.vmem [#allocation3], %s454_s7 }
  0x23   :  { %55 = vadd.xlane.f32.xlu1 %v54_v18  ;;  %45 = vadd.xlane.f32.xlu0 %v44_v19  ;;  %s464_s10 = sshll.u32 %s627_s30, 2  ;;  %s202_s14 = scalar_lea.vmem [#allocation3], %s455_s8 }
  0x24   :  { %s459_s12 = sshll.u32 %s629_s4, 2  ;;  %s256_s15 = scalar_lea.vmem [#allocation3], %s458_s9 }
  0x25   :  { %s316_s16 = scalar_lea.vmem [#allocation3], %s464_s10  ;;  %s260_s18 = scalar_lea.vmem [#allocation3], %s459_s12 }
  0x26   :  { %s470_s17 = sshll.u32 %s634_s6, 2  ;;  %s465_s19 = sshll.u32 %s632_s5, 2 }
  0x27   :  { %s376_s20 = scalar_lea.vmem [#allocation3], %s470_s17  ;;  %s320_s0 = scalar_lea.vmem [#allocation3], %s465_s19 }
  0x28   :  { %s471_s1 = sshll.u32 %s640_s11, 2  ;;  %s188_s21 = scalar_lea.vmem [#allocation2], %s454_s7 }
  0x29   :  { %s380_s22 = scalar_lea.vmem [#allocation3], %s471_s1  ;;  %s246_s23 = scalar_lea.vmem [#allocation2], %s458_s9 }
  0x2a   :  { %s193_s24 = scalar_lea.vmem [#allocation2], %s455_s8  ;;  %s306_s25 = scalar_lea.vmem [#allocation2], %s464_s10 }
  0x2b   :  { %s251_s26 = scalar_lea.vmem [#allocation2], %s459_s12  ;;  %s366_s27 = scalar_lea.vmem [#allocation2], %s470_s17 }
  0x2c   :  { %s311_s2 = scalar_lea.vmem [#allocation2], %s465_s19  ;;  %s371_s28 = scalar_lea.vmem [#allocation2], %s471_s1 }
  0xa8   :  { %v51_v26 = vpop.xlane.xlu1 %50  ;;  %v41_v27 = vpop.xlane.xlu0 %40 }
  0xa9   :  { %v59_v28 = vmul.f32 0.00390625, %v51_v26  ;;  %v57_v29 = vmul.f32 0.00390625, %v41_v27 }
  0xab   :  { %v85_v30 = vrot.slane %v59_v28, %v596_v25  ;;  %144 = vst.msk [vmem:[#allocation2 + $0x8] sm:$0xf] %vm141_vm1, %v59_v28  ;;  %v71_v31 = vrot.slane %v57_v29, %v596_v25  ;;  %142 = vst.msk [vmem:[#allocation2] sm:$0xf] %vm141_vm1, %v57_v29 }
  0xac   :  { %v56_v32 = vpop.xlane.xlu1 %55  ;;  %v46_v33 = vpop.xlane.xlu0 %45 }
  0xad   :  { %v99_v34 = vsub.f32 %v559_v0, %v85_v30  ;;  %v97_v35 = vsub.f32 %v564_v1, %v71_v31  ;;  %v60_v36 = vmul.f32 0.00390625, %v56_v32  ;;  %v58_v37 = vmul.f32 0.00390625, %v46_v33 }
  0xaf   :  { %v92_v38 = vrot.slane %v60_v36, %v596_v25  ;;  %145 = vst.msk [vmem:[#allocation2 + $0xc] sm:$0xf] %vm141_vm1, %v60_v36  ;;  %v78_v39 = vrot.slane %v58_v37, %v596_v25  ;;  %143 = vst.msk [vmem:[#allocation2 + $0x4] sm:$0xf] %vm141_vm1, %v58_v37  ;;  %v101_v40 = vmul.f32 %v97_v35, %v97_v35 }
  0xb0   :  { %v103_v41 = vmul.f32 %v99_v34, %v99_v34 }
  0xb1   :  { %v100_v42 = vsub.f32 %v569_v2, %v92_v38  ;;  %v98_v43 = vsub.f32 %v582_v7, %v78_v39  ;;  %v109_v44 = vcombine.high %v101_v40, %v101_v40  ;;  %v117_v45 = vsel %vm36_vm0, %v101_v40, 0.0 }
  0xb2   :  { %v111_v46 = vcombine.high %v103_v41, %v103_v41  ;;  %v127_v48 = vsel %vm36_vm0, %v103_v41, 0.0 }
  0xb3   :  { %v118_v47 = vsel %vm36_vm0, %v109_v44, 0.0  ;;  %v102_v49 = vmul.f32 %v98_v43, %v98_v43  ;;  %v104_v50 = vmul.f32 %v100_v42, %v100_v42 }
  0xb4   :  { %v119_v51 = vadd.f32 %v118_v47, %v117_v45  ;;  %v128_v52 = vsel %vm36_vm0, %v111_v46, 0.0 }
  0xb5   :  { %v110_v53 = vcombine.high %v102_v49, %v102_v49  ;;  %v112_v54 = vcombine.high %v104_v50, %v104_v50  ;;  %v129_v55 = vadd.f32 %v128_v52, %v127_v48  ;;  %v122_v56 = vsel %vm36_vm0, %v102_v49, 0.0 }
  0xb6   :  { %120 = vadd.xlane.f32.xlu0 %v119_v51  ;;  %v132_v58 = vsel %vm36_vm0, %v104_v50, 0.0 }
  0xb7   :  { %v123_v57 = vsel %vm36_vm0, %v110_v53, 0.0  ;;  %v133_v59 = vsel %vm36_vm0, %v112_v54, 0.0 }
  0xb8   :  { %v124_v60 = vadd.f32 %v123_v57, %v122_v56  ;;  %v134_v61 = vadd.f32 %v133_v59, %v132_v58 }
  0xba   :  { %130 = vadd.xlane.f32.xlu0 %v129_v55  ;;  %125 = vadd.xlane.f32.xlu1 %v124_v60 }
  0xbe   :  { %135 = vadd.xlane.f32.xlu1 %v134_v61 }
 0x13f   :  { %v121_v63 = vpop.xlane.xlu0 %120 }
 0x140   :  { %v137_v3 = vmul.f32 0.003921569, %v121_v63 }
 0x142   :  { %v146_v4 = vadd.f32 1e-05, %v137_v3 }
 0x143   :  { %v126_v5 = vpop.xlane.xlu1 %125  ;;  %v131_v6 = vpop.xlane.xlu0 %130 }
 0x144   :  { %484 = vrsqrt.f32 %v146_v4  ;;  %v138_v8 = vmul.f32 0.003921569, %v126_v5  ;;  %v139_v9 = vmul.f32 0.003921569, %v131_v6  ;;  %vm152_vm2 = vcmp.eq.f32.partialorder %v146_v4, inf }
 0x145   :  { %v155_v17 = vand.u32 2147483648, %v146_v4  ;;  %vm154_vm3 = vcmp.eq.f32.partialorder %v146_v4, 0.0 }
 0x146   :  { %v147_v10 = vadd.f32 1e-05, %v138_v8  ;;  %v148_v11 = vadd.f32 1e-05, %v139_v9 }
 0x147   :  { %v136_v12 = vpop.xlane.xlu1 %135 }
 0x148   :  { %v140_v13 = vmul.f32 0.003921569, %v136_v12  ;;  %486 = vrsqrt.f32 %v147_v10  ;;  %vm159_vm4 = vcmp.eq.f32.partialorder %v147_v10, inf  ;;  %v162_v23 = vand.u32 2147483648, %v147_v10 }
 0x149   :  { %488 = vrsqrt.f32 %v148_v11  ;;  %vm161_vm5 = vcmp.eq.f32.partialorder %v147_v10, 0.0  ;;  %vm166_vm6 = vcmp.eq.f32.partialorder %v148_v11, inf  ;;  %v169_v27 = vand.u32 2147483648, %v148_v11 }
 0x14a   :  { %v149_v14 = vadd.f32 1e-05, %v140_v13  ;;  %vm168_vm7 = vcmp.eq.f32.partialorder %v148_v11, 0.0 }
 0x14c   :  { %490 = vrsqrt.f32 %v149_v14  ;;  %vm173_vm8 = vcmp.eq.f32.partialorder %v149_v14, inf  ;;  %v176_v33 = vand.u32 2147483648, %v149_v14  ;;  %vm175_vm9 = vcmp.eq.f32.partialorder %v149_v14, 0.0 }
 0x151   :  { %v485_v15 = vpop.eup %484 }
 0x152   :  { %v151_v16 = vmul.f32 %v485_v15, %v146_v4  ;;  %v247_v15 = vld [vmem:[%s246_s23] sm:$0xf] }
 0x154   :  { %v153_v18 = vsel %vm152_vm2, %v146_v4, %v151_v16  ;;  %v189_v4 = vld [vmem:[%s188_s21] sm:$0xf] }
 0x155   :  { %v156_v19 = vsel %vm154_vm3, %v155_v17, %v153_v18  ;;  %v487_v20 = vpop.eup %486  ;;  %v190_v13 = vmul.f32 0.3, %v189_v4 }
 0x156   :  { %178 = vst.msk [vmem:[#allocation3] sm:$0xf] %vm141_vm1, %v156_v19  ;;  %v489_v21 = vpop.eup %488  ;;  %v158_v22 = vmul.f32 %v487_v20, %v147_v10  ;;  %v194_v19 = vld [vmem:[%s193_s24] sm:$0xf] }
 0x157   :  { %v165_v24 = vmul.f32 %v489_v21, %v148_v11 }
 0x158   :  { %v160_v26 = vsel %vm159_vm4, %v147_v10, %v158_v22  ;;  %v184_v10 = vld [vmem:[#allocation2] sm:$0xf] }
 0x159   :  { %v491_v28 = vpop.eup %490  ;;  %v163_v29 = vsel %vm161_vm5, %v162_v23, %v160_v26  ;;  %v167_v30 = vsel %vm166_vm6, %v148_v11, %v165_v24  ;;  %v186_v18 = vmul.f32 0.5, %v184_v10  ;;  %v248_v24 = vmul.f32 0.3, %v247_v15  ;;  %v301_v26 = vld [vmem:[#allocation2 + $0x8] sm:$0xf] }
 0x15a   :  { %179 = vst.msk [vmem:[#allocation3 + $0x4] sm:$0xf] %vm141_vm1, %v163_v29  ;;  %v170_v31 = vsel %vm168_vm7, %v169_v27, %v167_v30  ;;  %v172_v32 = vmul.f32 %v491_v28, %v149_v14  ;;  %v307_v27 = vld [vmem:[%s306_s25] sm:$0xf]  ;;  %v195_v29 = vmul.f32 0.2, %v194_v19 }
 0x15b   :  { %180 = vst.msk [vmem:[#allocation3 + $0x8] sm:$0xf] %vm141_vm1, %v170_v31  ;;  %v191_v22 = vadd.f32 %v190_v13, %v186_v18  ;;  %v252_v31 = vld [vmem:[%s251_s26] sm:$0xf] }
 0x15c   :  { %v174_v34 = vsel %vm173_vm8, %v149_v14, %v172_v32  ;;  %v241_v14 = vld [vmem:[#allocation2 + $0x4] sm:$0xf] }
 0x15d   :  { %v185_v35 = vld [vmem:[#allocation3] sm:$0xf]  ;;  %v177_v36 = vsel %vm175_vm9, %v176_v33, %v174_v34  ;;  %v244_v23 = vmul.f32 0.5, %v241_v14  ;;  %v196_v32 = vadd.f32 %v195_v29, %v191_v22  ;;  %v304_v34 = vmul.f32 0.5, %v301_v26 }
 0x15e   :  { %492 = vrcp.f32 %v185_v35  ;;  %181 = vst.msk [vmem:[#allocation3 + $0xc] sm:$0xf] %vm141_vm1, %v177_v36  ;;  %v197_v42 = vmul.f32 0.5, %v185_v35  ;;  %v308_v35 = vmul.f32 0.3, %v307_v27 }
 0x15f   :  { %v249_v33 = vadd.f32 %v248_v24, %v244_v23  ;;  %v361_v36 = vld [vmem:[#allocation2 + $0xc] sm:$0xf] }
 0x161   :  { %v243_v37 = vld [vmem:[#allocation3 + $0x4] sm:$0xf] }
 0x162   :  { %494 = vrcp.f32 %v243_v37  ;;  %v303_v38 = vld [vmem:[#allocation3 + $0x8] sm:$0xf]  ;;  %v255_v48 = vmul.f32 0.5, %v243_v37  ;;  %v367_v37 = vld [vmem:[%s366_s27] sm:$0xf] }
 0x163   :  { %496 = vrcp.f32 %v303_v38  ;;  %v315_v58 = vmul.f32 0.5, %v303_v38 }
 0x165   :  { %v199_v39 = vld [vmem:[%s198_s13] sm:$0xf]  ;;  %v363_v49 = vld [vmem:[#allocation3 + $0xc] sm:$0xf] }
 0x166   :  { %v203_v40 = vld [vmem:[%s202_s14] sm:$0xf]  ;;  %v200_v43 = vmul.f32 0.3, %v199_v39  ;;  %498 = vrcp.f32 %v363_v49  ;;  %v375_v62 = vmul.f32 0.5, %v363_v49 }
 0x167   :  { %v257_v41 = vld [vmem:[%s256_s15] sm:$0xf]  ;;  %v204_v47 = vmul.f32 0.2, %v203_v40  ;;  %v253_v39 = vmul.f32 0.2, %v252_v31 }
 0x168   :  { %v258_v44 = vmul.f32 0.3, %v257_v41  ;;  %v317_v45 = vld [vmem:[%s316_s16] sm:$0xf]  ;;  %v201_v46 = vadd.f32 %v200_v43, %v197_v42  ;;  %v309_v43 = vadd.f32 %v308_v35, %v304_v34 }
 0x169   :  { %v261_v50 = vld [vmem:[%s260_s18] sm:$0xf]  ;;  %v318_v54 = vmul.f32 0.3, %v317_v45  ;;  %v254_v42 = vadd.f32 %v253_v39, %v249_v33  ;;  %v368_v45 = vmul.f32 0.3, %v367_v37 }
 0x16a   :  { %v205_v52 = vadd.f32 %v204_v47, %v201_v46  ;;  %v259_v53 = vadd.f32 %v258_v44, %v255_v48  ;;  %v377_v55 = vld [vmem:[%s376_s20] sm:$0xf]  ;;  %v262_v57 = vmul.f32 0.2, %v261_v50  ;;  %v364_v44 = vmul.f32 0.5, %v361_v36 }
 0x16b   :  { %v493_v51 = vpop.eup %492  ;;  %v321_v59 = vld [vmem:[%s320_s0] sm:$0xf]  ;;  %v319_v61 = vadd.f32 %v318_v54, %v315_v58  ;;  %v378_v63 = vmul.f32 0.3, %v377_v55 }
 0x16c   :  { %v207_v56 = vmul.f32 %v493_v51, %v205_v52  ;;  %v263_v60 = vadd.f32 %v262_v57, %v259_v53  ;;  %v322_v6 = vmul.f32 0.2, %v321_v59  ;;  %v381_v9 = vld [vmem:[%s380_s22] sm:$0xf]  ;;  %v369_v51 = vadd.f32 %v368_v45, %v364_v44 }
 0x16d   :  { %v379_v12 = vadd.f32 %v378_v63, %v375_v62  ;;  %v382_v17 = vmul.f32 0.2, %v381_v9  ;;  %v312_v41 = vld [vmem:[%s311_s2] sm:$0xf] }
 0x16e   :  { %213 = vperm.xlu0 %478, %v207_v56   ;;  %v323_v11 = vadd.f32 %v322_v6, %v319_v61  ;;  %v208_v30 = vmul.f32 %v207_v56, %v184_v10  ;;  %v313_v47 = vmul.f32 0.2, %v312_v41  ;;  %v372_v49 = vld [vmem:[%s371_s28] sm:$0xf] }
 0x16f   :  { %v495_v3 = vpop.eup %494  ;;  %v383_v21 = vadd.f32 %v382_v17, %v379_v12  ;;  %v373_v53 = vmul.f32 0.2, %v372_v49 }
 0x170   :  { %v265_v5 = vmul.f32 %v495_v3, %v263_v60  ;;  %v497_v8 = vpop.eup %496  ;;  %v209_v38 = vsub.f32 %v196_v32, %v208_v30  ;;  %v314_v50 = vadd.f32 %v313_v47, %v309_v43 }
 0x171   :  { %v325_v16 = vmul.f32 %v497_v8, %v323_v11  ;;  %v374_v55 = vadd.f32 %v373_v53, %v369_v51 }
 0x172   :  { %272 = vperm.xlu1 %479, %v265_v5   ;;  %v266_v40 = vmul.f32 %v265_v5, %v241_v14 }
 0x173   :  { %v499_v20 = vpop.eup %498  ;;  %v326_v48 = vmul.f32 %v325_v16, %v301_v26 }
 0x174   :  { %v385_v28 = vmul.f32 %v499_v20, %v383_v21  ;;  %v267_v46 = vsub.f32 %v254_v42, %v266_v40 }
 0x175   :  { %v327_v52 = vsub.f32 %v314_v50, %v326_v48 }
 0x176   :  { %332 = vperm.xlu1 %479, %v325_v16   ;;  %v386_v54 = vmul.f32 %v385_v28, %v361_v36 }
 0x178   :  { %v387_v56 = vsub.f32 %v374_v55, %v386_v54 }
 0x17a   :  { %392 = vperm.xlu1 %479, %v385_v28  }
 0x17e   :  { %226 = vperm.xlu1 %479, %v209_v38  }
 0x182   :  { %285 = vperm.xlu1 %479, %v267_v46  }
 0x186   :  { %345 = vperm.xlu1 %479, %v327_v52  }
 0x18a   :  { %405 = vperm.xlu1 %479, %v387_v56  }
 0x1e9   :  { %v214_v59 = vpop.permute.xlu0 %213 }
 0x1ea   :  { %v221_v61 = vrot.slane %v214_v59, %v596_v25 }
 0x1ec   :  { %v223_v63 = vmul.f32 %v221_v61, %v564_v1 }
 0x1ed   :  { %v273_v57 = vpop.permute.xlu1 %272 }
 0x1ee   :  { %v280_v3 = vrot.slane %v273_v57, %v596_v25 }
 0x1f0   :  { %v282_v8 = vmul.f32 %v280_v3, %v582_v7 }
 0x1f1   :  { %v333_v58 = vpop.permute.xlu1 %332 }
 0x1f2   :  { %v340_v9 = vrot.slane %v333_v58, %v596_v25 }
 0x1f4   :  { %v342_v1 = vmul.f32 %v340_v9, %v559_v0 }
 0x1f5   :  { %v393_v60 = vpop.permute.xlu1 %392 }
 0x1f6   :  { %v400_v13 = vrot.slane %v393_v60, %v596_v25 }
 0x1f8   :  { %v402_v16 = vmul.f32 %v400_v13, %v569_v2 }
 0x1f9   :  { %v227_v62 = vpop.permute.xlu1 %226 }
 0x1fa   :  { %v234_v4 = vrot.slane %v227_v62, %v596_v25 }
 0x1fc   :  { %v236_v5 = vadd.f32 %v234_v4, %v223_v63 }
 0x1fd   :  { %v286_v6 = vpop.permute.xlu1 %285 }
 0x1fe   :  { %237 = vst [vmem:[%s704_s3] sm:$0xff] %v236_v5  ;;  %v293_v10 = vrot.slane %v286_v6, %v596_v25 }
 0x200   :  { %v295_v11 = vadd.f32 %v293_v10, %v282_v8 }
 0x201   :  { %v346_v12 = vpop.permute.xlu1 %345 }
 0x202   :  { %461 = vst [vmem:[%s704_s3 + $0x8] sm:$0xff] %v295_v11  ;;  %v353_v7 = vrot.slane %v346_v12, %v596_v25 }
 0x204   :  { %v355_v14 = vadd.f32 %v353_v7, %v342_v1 }
 0x205   :  { %v406_v15 = vpop.permute.xlu1 %405 }
 0x206   :  { %467 = vst [vmem:[%s704_s3 + $0x10] sm:$0xff] %v355_v14  ;;  %v413_v17 = vrot.slane %v406_v15, %v596_v25 }
 0x208   :  { %v415_v18 = vadd.f32 %v413_v17, %v402_v16 }
 0x20a   :  { %473 = vst [vmem:[%s704_s3 + $0x18] sm:$0xff] %v415_v18 }

</bundles_post_ra>
